<compile_context>
chip_gen: v5e
topology: v5e:2x2
jax: 0.10.0
libtpu: 0.0.40
codegen_flags: <defaults>
</compile_context>

<pallas_src>
import functools

import numpy as np
import jax
import jax.numpy as jnp
from jax.experimental import pallas as pl
from jax.experimental.pallas import tpu as pltpu


# ---------------------------------------------------------------------------
# Trace-time constant / parameter preprocessing helpers (tiny, run in XLA)
# ---------------------------------------------------------------------------

def _conv_row_matmuls(w, wp, wo):
    """w: [Cout, Cin, 3, 3] -> m: [3, Cin*wp, Cout*wo] such that a 3x3 / pad-1 /
    stride-1 conv becomes  out[(b,y), (o,x)] = sum_dy Xpad[(b, y+dy), (c, j)] @ m[dy]
    with m[dy, c*wp + j, o*wo + x] = w[o, c, dy, j - x] for 0 <= j - x < 3."""
    cout, cin, kh, kw = w.shape
    band = (np.arange(wp)[None, :, None]
            == np.arange(wo)[None, None, :] + np.arange(kw)[:, None, None])
    band = jnp.asarray(band.astype(np.float32))                 # [kw, wp, wo]
    m = jnp.einsum('ocyd,djx->ycjox', w, band)                  # [kh, cin, wp, cout, wo]
    return m.reshape(kh, cin * wp, cout * wo)


def _parity_selectors(n_half):
    """[2, n, 2n] 0/1 matrices selecting even / odd rows (row half of 2x2 pool)."""
    sel = np.zeros((2, n_half, 2 * n_half), np.float32)
    r = np.arange(n_half)
    sel[0, r, 2 * r] = 1.0
    sel[1, r, 2 * r + 1] = 1.0
    return sel


def _pool_col_gather(nchan, win, pad_out):
    """[2, nchan*win, nchan*(win//2 + 2*pad_out)] 0/1 matrices mapping pooling
    window column (c, 2*px + v) -> output column (c, pad_out + px).  Output
    columns with no source stay exactly zero (free width zero-padding for the
    next conv's padded input layout)."""
    wout = win // 2
    wcol = wout + 2 * pad_out
    g = np.zeros((2, nchan * win, nchan * wcol), np.float32)
    for v in range(2):
        for c in range(nchan):
            for px in range(wout):
                g[v, c * win + 2 * px + v, c * wcol + pad_out + px] = 1.0
    return g


# ---------------------------------------------------------------------------
# Single fused Pallas kernel for the whole forward pass
# ---------------------------------------------------------------------------

def fused_forward(x, w1, b1, gamma, beta, rmean, rvar, w2, b2, wl, bl, eps=1e-5):
    """conv(3x3,p1)+BN+ReLU+maxpool2 -> conv(3x3,p1)+ReLU+maxpool2 -> flatten -> linear."""
    B, Cin, H, W = x.shape
    C1, C2 = w1.shape[0], w2.shape[0]
    assert H % 4 == 0 and W % 4 == 0, (H, W)
    Hp, Wp = H + 2, W + 2                 # padded spatial dims for conv1
    H2, W2 = H // 2, W // 2               # after pool1
    Hp2, Wp2 = H2 + 2, W2 + 2             # padded dims for conv2
    H3, W3 = H2 // 2, W2 // 2             # after pool2
    NOUT = wl.shape[0]
    assert wl.shape[1] == C2 * H3 * W3
    R1, R2 = B * Hp, B * Hp2
    f32 = jnp.float32

    # --- fold inference BN into conv1; pre-bake all weight layouts (KB-scale XLA) ---
    scale = gamma * jax.lax.rsqrt(rvar + eps)
    m1 = _conv_row_matmuls(w1 * scale[:, None, None, None], Wp, W)      # [3, Cin*Wp, C1*W]
    b1row = jnp.repeat((b1 - rmean) * scale + beta, W)[None, :]          # [1, C1*W]
    m2 = _conv_row_matmuls(w2, Wp2, W2)                                  # [3, C1*Wp2, C2*W2]
    b2row = jnp.repeat(b2, W2)[None, :]                                  # [1, C2*W2]
    # linear weight regrouped per pooled row so flatten keeps torch NCHW order
    wlr = wl.reshape(NOUT, C2, H3, W3).transpose(2, 1, 3, 0).reshape(H3, C2 * W3, NOUT)
    blrow = bl[None, :]

    # NCHW -> padded [(b, row), (c, col)] layout consumed directly by the kernel
    xp = jnp.pad(x, ((0, 0), (0, 0), (1, 1), (1, 1)))
    s1 = xp.transpose(0, 2, 1, 3).reshape(R1, Cin * Wp)
    s1 = jnp.pad(s1, ((0, 2), (0, 0)))                                   # spare rows for dy shifts

    # constant 0/1 selector matrices (pooling row/column selection + relayout)
    sel1 = jnp.asarray(_parity_selectors(R1 // 2))                       # [2, R1/2, R1]
    sel2 = jnp.asarray(_parity_selectors(R2 // 2))                       # [2, R2/2, R2]
    g1 = jnp.asarray(_pool_col_gather(C1, W, 1))                         # [2, C1*W, C1*Wp2]
    g2 = jnp.asarray(_pool_col_gather(C2, W2, 0))                        # [2, C2*W2, C2*W3]

    def kernel(s1_ref, m1_ref, b1_ref, m2_ref, b2_ref,
               sel1_ref, g1_ref, sel2_ref, g2_ref, wl_ref, bl_ref,
               out_ref, s2_ref, p1_ref, p2_ref):
        # ---- conv1 (3x3, stride 1, pad 1) with folded BN, + ReLU -----------
        acc1 = jnp.zeros((R1, C1 * W), f32)
        for dy in range(3):                                   # 3 row-shifted matmuls
            acc1 = acc1 + jnp.dot(s1_ref[pl.ds(dy, R1), :], m1_ref[dy],
                                  preferred_element_type=f32)
        r1 = jnp.maximum(acc1 + b1_ref[...], 0.0)             # rows (b, y), cols (o, x)

        # ---- 2x2/2 max-pool fused with relayout to conv2's padded layout ---
        y1 = jnp.maximum(jnp.dot(sel1_ref[0], r1, preferred_element_type=f32),
                         jnp.dot(sel1_ref[1], r1, preferred_element_type=f32))
        p1_ref[...] = jnp.maximum(
            jnp.dot(y1, g1_ref[0], preferred_element_type=f32),
            jnp.dot(y1, g1_ref[1], preferred_element_type=f32))
        s2_ref[...] = jnp.zeros((R2 + 2, C1 * Wp2), f32)      # zero rows = height padding
        for b in range(B):
            s2_ref[pl.ds(b * Hp2 + 1, H2), :] = p1_ref[pl.ds(b * (Hp // 2), H2), :]

        # ---- conv2 + bias + ReLU -------------------------------------------
        acc2 = jnp.zeros((R2, C2 * W2), f32)
        for dy in range(3):
            acc2 = acc2 + jnp.dot(s2_ref[pl.ds(dy, R2), :], m2_ref[dy],
                                  preferred_element_type=f32)
        r2 = jnp.maximum(acc2 + b2_ref[...], 0.0)

        # ---- second 2x2/2 max-pool -> [(b, py2), (o, px2)] ------------------
        y2 = jnp.maximum(jnp.dot(sel2_ref[0], r2, preferred_element_type=f32),
                         jnp.dot(sel2_ref[1], r2, preferred_element_type=f32))
        p2_ref[...] = jnp.maximum(
            jnp.dot(y2, g2_ref[0], preferred_element_type=f32),
            jnp.dot(y2, g2_ref[1], preferred_element_type=f32))

        # ---- flatten (torch NCHW order) + linear ----------------------------
        for b in range(B):
            acc = bl_ref[...]                                 # [1, NOUT]
            base = b * (Hp2 // 2)
            for py in range(H3):
                acc = acc + jnp.dot(p2_ref[pl.ds(base + py, 1), :], wl_ref[py],
                                    preferred_element_type=f32)
            out_ref[pl.ds(b, 1), :] = acc

    vmem = pl.BlockSpec(memory_space=pltpu.MemorySpace.VMEM)
    return pl.pallas_call(
        kernel,
        out_shape=jax.ShapeDtypeStruct((B, NOUT), f32),
        in_specs=[vmem] * 11,
        out_specs=vmem,
        scratch_shapes=[
            pltpu.VMEM((R2 + 2, C1 * Wp2), f32),   # padded conv2 input
            pltpu.VMEM((R1 // 2, C1 * Wp2), f32),  # pooled layer-1 activations
            pltpu.VMEM((R2 // 2, C2 * W3), f32),   # pooled layer-2 activations
        ],
    )(s1, m1, b1row, m2, b2row, sel1, g1, sel2, g2, wlr, blrow)


# ---------------------------------------------------------------------------
# Learner_AMPHIBIAN-style parameter init + config-driven forward
# ---------------------------------------------------------------------------

def init_params(config, key):
    """Deterministic kaiming-style init mirroring Learner_AMPHIBIAN.__init__."""
    vars_, vars_bn = [], []
    for (name, param, _extra) in config:
        if name == 'conv2d':
            cout, cin, kh, kw = param[:4]
            key, sub = jax.random.split(key)
            fan_in = cin * kh * kw
            std = (2.0 / fan_in) ** 0.5        # kaiming_normal_
            w = std * jax.random.normal(sub, (cout, cin, kh, kw), jnp.float32)
            b = jnp.zeros((cout,), jnp.float32)
            vars_ += [w, b]
        elif name == 'linear':
            out_f, in_f = param
            key, sub = jax.random.split(key)
            std = (2.0 / in_f) ** 0.5
            w = std * jax.random.normal(sub, (out_f, in_f), jnp.float32)
            b = jnp.zeros((out_f,), jnp.float32)
            vars_ += [w, b]
        elif name == 'bn':
            c = param[0]
            vars_ += [jnp.ones((c,), jnp.float32), jnp.zeros((c,), jnp.float32)]
            vars_bn += [jnp.zeros((c,), jnp.float32), jnp.ones((c,), jnp.float32)]
        elif name in ['tanh', 'relu', 'upsample', 'avg_pool2d', 'max_pool2d',
                      'flatten', 'reshape', 'leakyrelu', 'sigmoid',
                      'cat', 'cat_start', 'rep']:
            continue
        else:
            raise NotImplementedError(name)
    return vars_, vars_bn


_EXPECTED = ['conv2d', 'bn', 'relu', 'max_pool2d',
             'conv2d', 'relu', 'max_pool2d', 'flatten', 'linear']


def forward(config, vars_, vars_bn, x, bn_training=False, feature=False):
    """Fused-single-kernel forward for the conv/bn/relu/pool x2 + linear config.

    Matches Learner_AMPHIBIAN.forward with bn_training=False (running stats)."""
    names = [c[0] for c in config]
    assert names == _EXPECTED, names
    assert list(config[0][1][2:]) == [3, 3, 1, 1] and list(config[4][1][2:]) == [3, 3, 1, 1]
    assert list(config[3][1]) == [2, 2, 0] and list(config[6][1]) == [2, 2, 0]
    # TODO(synk): bn_training=True (batch statistics), cosine linear, leakyrelu,
    # upsample, avg_pool2d, cat/cat_start/rep branches of the config are not
    # implemented in the fused kernel (not exercised by this config).
    w1, b1, gamma, beta, w2, b2, wl, bl = vars_
    rmean, rvar = vars_bn
    return fused_forward(x, w1, b1, gamma, beta, rmean, rvar, w2, b2, wl, bl)


# Small CNN config consistent with the module (conv/bn/relu/pool x2 + linear)
CONFIG = [
    ('conv2d',     [8, 4, 3, 3, 1, 1], ''),   # out=8, in=4, 3x3, stride=1, pad=1
    ('bn',         [8],                ''),
    ('relu',       [True],             ''),
    ('max_pool2d', [2, 2, 0],          ''),
    ('conv2d',     [8, 8, 3, 3, 1, 1], ''),
    ('relu',       [True],             ''),
    ('max_pool2d', [2, 2, 0],          ''),
    ('flatten',    [],                 ''),
    ('linear',     [10, 8 * 4 * 4],    ''),    # 8 ch * 4 * 4 spatial -> 10 classes
]


# ---------------------------------------------------------------------------
# Pure-JAX/XLA reference (for a correctness cross-check in __main__ only)
# ---------------------------------------------------------------------------

def reference_forward(x, w1, b1, gamma, beta, rmean, rvar, w2, b2, wl, bl, eps=1e-5):
    dn = ('NCHW', 'OIHW', 'NCHW')
    y = jax.lax.conv_general_dilated(x, w1, (1, 1), ((1, 1), (1, 1)), dimension_numbers=dn)
    y = y + b1[None, :, None, None]
    y = (y - rmean[None, :, None, None]) * jax.lax.rsqrt(rvar[None, :, None, None] + eps)
    y = y * gamma[None, :, None, None] + beta[None, :, None, None]
    y = jnp.maximum(y, 0.0)
    y = jax.lax.reduce_window(y, -jnp.inf, jax.lax.max, (1, 1, 2, 2), (1, 1, 2, 2), 'VALID')
    y = jax.lax.conv_general_dilated(y, w2, (1, 1), ((1, 1), (1, 1)), dimension_numbers=dn)
    y = y + b2[None, :, None, None]
    y = jnp.maximum(y, 0.0)
    y = jax.lax.reduce_window(y, -jnp.inf, jax.lax.max, (1, 1, 2, 2), (1, 1, 2, 2), 'VALID')
    y = y.reshape(y.shape[0], -1)
    return y @ wl.T + bl


if __name__ == "__main__":
    key = jax.random.PRNGKey(0)
    key, xkey = jax.random.split(key)
    x = jax.random.normal(xkey, (2, 4, 16, 16), jnp.float32)   # [b, c, h, w]

    vars_, vars_bn = init_params(CONFIG, key)

    fwd = jax.jit(functools.partial(forward, CONFIG))
    out = fwd(vars_, vars_bn, x)
    jax.block_until_ready(out)

    assert out.shape == (2, 10), out.shape
    assert bool(jnp.all(jnp.isfinite(out)))

    # cross-check against a plain XLA implementation of the same inference path
    w1, b1, gamma, beta, w2, b2, wl, bl = vars_
    rmean, rvar = vars_bn
    ref = reference_forward(x, w1, b1, gamma, beta, rmean, rvar, w2, b2, wl, bl)
    np.testing.assert_allclose(np.asarray(out), np.asarray(ref), rtol=5e-2, atol=1e-1)

    print("KERNEL_OK")
</pallas_src>

<mosaic_0001>
module attributes {stable_mosaic.version = 11 : i64} {
  func.func @kernel(%arg0: memref<38x72xf32, #tpu.memory_space<vmem>>, %arg1: memref<3x72x128xf32, #tpu.memory_space<vmem>>, %arg2: memref<1x128xf32, #tpu.memory_space<vmem>>, %arg3: memref<3x80x64xf32, #tpu.memory_space<vmem>>, %arg4: memref<1x64xf32, #tpu.memory_space<vmem>>, %arg5: memref<2x18x36xf32, #tpu.memory_space<vmem>>, %arg6: memref<2x128x80xf32, #tpu.memory_space<vmem>>, %arg7: memref<2x10x20xf32, #tpu.memory_space<vmem>>, %arg8: memref<2x64x32xf32, #tpu.memory_space<vmem>>, %arg9: memref<4x32x10xf32, #tpu.memory_space<vmem>>, %arg10: memref<1x10xf32, #tpu.memory_space<vmem>>, %arg11: memref<2x10xf32, #tpu.memory_space<vmem>>, %arg12: memref<22x80xf32, #tpu.memory_space<vmem>>, %arg13: memref<18x80xf32, #tpu.memory_space<vmem>>, %arg14: memref<10x32xf32, #tpu.memory_space<vmem>>) attributes {dimension_semantics = [], scalar_prefetch = 0 : i64, scratch_operands = 3 : i64, tpu.core_type = #tpu.core_type<tc>} {
    %cst = arith.constant 0.000000e+00 : f32
    %0 = vector.broadcast %cst : f32 to vector<36x128xf32>
    %c0 = arith.constant 0 : index
    %c0_0 = arith.constant 0 : index
    %1 = vector.load %arg0[%c0, %c0_0] : memref<38x72xf32, #tpu.memory_space<vmem>>, vector<36x72xf32>
    %c0_1 = arith.constant 0 : index
    %c0_2 = arith.constant 0 : index
    %c0_3 = arith.constant 0 : index
    %2 = vector.load %arg1[%c0_1, %c0_2, %c0_3] : memref<3x72x128xf32, #tpu.memory_space<vmem>>, vector<1x72x128xf32>
    %3 = vector.shape_cast %2 : vector<1x72x128xf32> to vector<72x128xf32>
    %cst_4 = arith.constant dense<0.000000e+00> : vector<36x128xf32>
    %4 = tpu.matmul %1, %3, %cst_4 {dimension_numbers = #tpu.dot_dimension_numbers<[1], [0], [0], [1], [0, 0, 1, 1], [], []>} : vector<36x72xf32>, vector<72x128xf32>, vector<36x128xf32> -> vector<36x128xf32>
    %5 = arith.addf %0, %4 : vector<36x128xf32>
    %c1 = arith.constant 1 : index
    %c0_5 = arith.constant 0 : index
    %6 = vector.load %arg0[%c1, %c0_5] : memref<38x72xf32, #tpu.memory_space<vmem>>, vector<36x72xf32>
    %c1_6 = arith.constant 1 : index
    %c0_7 = arith.constant 0 : index
    %c0_8 = arith.constant 0 : index
    %7 = vector.load %arg1[%c1_6, %c0_7, %c0_8] : memref<3x72x128xf32, #tpu.memory_space<vmem>>, vector<1x72x128xf32>
    %8 = vector.shape_cast %7 : vector<1x72x128xf32> to vector<72x128xf32>
    %cst_9 = arith.constant dense<0.000000e+00> : vector<36x128xf32>
    %9 = tpu.matmul %6, %8, %cst_9 {dimension_numbers = #tpu.dot_dimension_numbers<[1], [0], [0], [1], [0, 0, 1, 1], [], []>} : vector<36x72xf32>, vector<72x128xf32>, vector<36x128xf32> -> vector<36x128xf32>
    %10 = arith.addf %5, %9 : vector<36x128xf32>
    %c2 = arith.constant 2 : index
    %c0_10 = arith.constant 0 : index
    %11 = vector.load %arg0[%c2, %c0_10] : memref<38x72xf32, #tpu.memory_space<vmem>>, vector<36x72xf32>
    %c2_11 = arith.constant 2 : index
    %c0_12 = arith.constant 0 : index
    %c0_13 = arith.constant 0 : index
    %12 = vector.load %arg1[%c2_11, %c0_12, %c0_13] : memref<3x72x128xf32, #tpu.memory_space<vmem>>, vector<1x72x128xf32>
    %13 = vector.shape_cast %12 : vector<1x72x128xf32> to vector<72x128xf32>
    %cst_14 = arith.constant dense<0.000000e+00> : vector<36x128xf32>
    %14 = tpu.matmul %11, %13, %cst_14 {dimension_numbers = #tpu.dot_dimension_numbers<[1], [0], [0], [1], [0, 0, 1, 1], [], []>} : vector<36x72xf32>, vector<72x128xf32>, vector<36x128xf32> -> vector<36x128xf32>
    %15 = arith.addf %10, %14 : vector<36x128xf32>
    %c0_15 = arith.constant 0 : index
    %c0_16 = arith.constant 0 : index
    %16 = vector.load %arg2[%c0_15, %c0_16] : memref<1x128xf32, #tpu.memory_space<vmem>>, vector<1x128xf32>
    %17 = vector.broadcast %16 : vector<1x128xf32> to vector<36x128xf32>
    %18 = arith.addf %15, %17 : vector<36x128xf32>
    %cst_17 = arith.constant 0.000000e+00 : f32
    %19 = vector.broadcast %cst_17 : f32 to vector<36x128xf32>
    %20 = arith.maximumf %18, %19 : vector<36x128xf32>
    %c0_18 = arith.constant 0 : index
    %c0_19 = arith.constant 0 : index
    %c0_20 = arith.constant 0 : index
    %21 = vector.load %arg5[%c0_18, %c0_19, %c0_20] : memref<2x18x36xf32, #tpu.memory_space<vmem>>, vector<1x18x36xf32>
    %22 = vector.shape_cast %21 : vector<1x18x36xf32> to vector<18x36xf32>
    %cst_21 = arith.constant dense<0.000000e+00> : vector<18x128xf32>
    %23 = tpu.matmul %22, %20, %cst_21 {dimension_numbers = #tpu.dot_dimension_numbers<[1], [0], [0], [1], [0, 0, 1, 1], [], []>} : vector<18x36xf32>, vector<36x128xf32>, vector<18x128xf32> -> vector<18x128xf32>
    %c1_22 = arith.constant 1 : index
    %c0_23 = arith.constant 0 : index
    %c0_24 = arith.constant 0 : index
    %24 = vector.load %arg5[%c1_22, %c0_23, %c0_24] : memref<2x18x36xf32, #tpu.memory_space<vmem>>, vector<1x18x36xf32>
    %25 = vector.shape_cast %24 : vector<1x18x36xf32> to vector<18x36xf32>
    %cst_25 = arith.constant dense<0.000000e+00> : vector<18x128xf32>
    %26 = tpu.matmul %25, %20, %cst_25 {dimension_numbers = #tpu.dot_dimension_numbers<[1], [0], [0], [1], [0, 0, 1, 1], [], []>} : vector<18x36xf32>, vector<36x128xf32>, vector<18x128xf32> -> vector<18x128xf32>
    %27 = arith.maximumf %23, %26 : vector<18x128xf32>
    %c0_26 = arith.constant 0 : index
    %c0_27 = arith.constant 0 : index
    %c0_28 = arith.constant 0 : index
    %28 = vector.load %arg6[%c0_26, %c0_27, %c0_28] : memref<2x128x80xf32, #tpu.memory_space<vmem>>, vector<1x128x80xf32>
    %29 = vector.shape_cast %28 : vector<1x128x80xf32> to vector<128x80xf32>
    %cst_29 = arith.constant dense<0.000000e+00> : vector<18x80xf32>
    %30 = tpu.matmul %27, %29, %cst_29 {dimension_numbers = #tpu.dot_dimension_numbers<[1], [0], [0], [1], [0, 0, 1, 1], [], []>} : vector<18x128xf32>, vector<128x80xf32>, vector<18x80xf32> -> vector<18x80xf32>
    %c1_30 = arith.constant 1 : index
    %c0_31 = arith.constant 0 : index
    %c0_32 = arith.constant 0 : index
    %31 = vector.load %arg6[%c1_30, %c0_31, %c0_32] : memref<2x128x80xf32, #tpu.memory_space<vmem>>, vector<1x128x80xf32>
    %32 = vector.shape_cast %31 : vector<1x128x80xf32> to vector<128x80xf32>
    %cst_33 = arith.constant dense<0.000000e+00> : vector<18x80xf32>
    %33 = tpu.matmul %27, %32, %cst_33 {dimension_numbers = #tpu.dot_dimension_numbers<[1], [0], [0], [1], [0, 0, 1, 1], [], []>} : vector<18x128xf32>, vector<128x80xf32>, vector<18x80xf32> -> vector<18x80xf32>
    %34 = arith.maximumf %30, %33 : vector<18x80xf32>
    %c0_34 = arith.constant 0 : index
    %c0_35 = arith.constant 0 : index
    %35 = vector.load %arg13[%c0_34, %c0_35] : memref<18x80xf32, #tpu.memory_space<vmem>>, vector<18x80xf32>
    tpu.vector_store %arg13[%c0_34, %c0_35], %34 {strides = array<i32>} : memref<18x80xf32, #tpu.memory_space<vmem>>, vector<18x80xf32>,
    %cst_36 = arith.constant 0.000000e+00 : f32
    %36 = vector.broadcast %cst_36 : f32 to vector<22x80xf32>
    %c0_37 = arith.constant 0 : index
    %c0_38 = arith.constant 0 : index
    %37 = vector.load %arg12[%c0_37, %c0_38] : memref<22x80xf32, #tpu.memory_space<vmem>>, vector<22x80xf32>
    tpu.vector_store %arg12[%c0_37, %c0_38], %36 {strides = array<i32>} : memref<22x80xf32, #tpu.memory_space<vmem>>, vector<22x80xf32>,
    %c0_39 = arith.constant 0 : index
    %c0_40 = arith.constant 0 : index
    %38 = vector.load %arg13[%c0_39, %c0_40] : memref<18x80xf32, #tpu.memory_space<vmem>>, vector<8x80xf32>
    %c1_41 = arith.constant 1 : index
    %c0_42 = arith.constant 0 : index
    %39 = vector.load %arg12[%c1_41, %c0_42] : memref<22x80xf32, #tpu.memory_space<vmem>>, vector<8x80xf32>
    tpu.vector_store %arg12[%c1_41, %c0_42], %38 {strides = array<i32>} : memref<22x80xf32, #tpu.memory_space<vmem>>, vector<8x80xf32>,
    %c9 = arith.constant 9 : index
    %c0_43 = arith.constant 0 : index
    %40 = vector.load %arg13[%c9, %c0_43] : memref<18x80xf32, #tpu.memory_space<vmem>>, vector<8x80xf32>
    %c11 = arith.constant 11 : index
    %c0_44 = arith.constant 0 : index
    %41 = vector.load %arg12[%c11, %c0_44] : memref<22x80xf32, #tpu.memory_space<vmem>>, vector<8x80xf32>
    tpu.vector_store %arg12[%c11, %c0_44], %40 {strides = array<i32>} : memref<22x80xf32, #tpu.memory_space<vmem>>, vector<8x80xf32>,
    %cst_45 = arith.constant 0.000000e+00 : f32
    %42 = vector.broadcast %cst_45 : f32 to vector<20x64xf32>
    %c0_46 = arith.constant 0 : index
    %c0_47 = arith.constant 0 : index
    %43 = vector.load %arg12[%c0_46, %c0_47] : memref<22x80xf32, #tpu.memory_space<vmem>>, vector<20x80xf32>
    %c0_48 = arith.constant 0 : index
    %c0_49 = arith.constant 0 : index
    %c0_50 = arith.constant 0 : index
    %44 = vector.load %arg3[%c0_48, %c0_49, %c0_50] : memref<3x80x64xf32, #tpu.memory_space<vmem>>, vector<1x80x64xf32>
    %45 = vector.shape_cast %44 : vector<1x80x64xf32> to vector<80x64xf32>
    %cst_51 = arith.constant dense<0.000000e+00> : vector<20x64xf32>
    %46 = tpu.matmul %43, %45, %cst_51 {dimension_numbers = #tpu.dot_dimension_numbers<[1], [0], [0], [1], [0, 0, 1, 1], [], []>} : vector<20x80xf32>, vector<80x64xf32>, vector<20x64xf32> -> vector<20x64xf32>
    %47 = arith.addf %42, %46 : vector<20x64xf32>
    %c1_52 = arith.constant 1 : index
    %c0_53 = arith.constant 0 : index
    %48 = vector.load %arg12[%c1_52, %c0_53] : memref<22x80xf32, #tpu.memory_space<vmem>>, vector<20x80xf32>
    %c1_54 = arith.constant 1 : index
    %c0_55 = arith.constant 0 : index
    %c0_56 = arith.constant 0 : index
    %49 = vector.load %arg3[%c1_54, %c0_55, %c0_56] : memref<3x80x64xf32, #tpu.memory_space<vmem>>, vector<1x80x64xf32>
    %50 = vector.shape_cast %49 : vector<1x80x64xf32> to vector<80x64xf32>
    %cst_57 = arith.constant dense<0.000000e+00> : vector<20x64xf32>
    %51 = tpu.matmul %48, %50, %cst_57 {dimension_numbers = #tpu.dot_dimension_numbers<[1], [0], [0], [1], [0, 0, 1, 1], [], []>} : vector<20x80xf32>, vector<80x64xf32>, vector<20x64xf32> -> vector<20x64xf32>
    %52 = arith.addf %47, %51 : vector<20x64xf32>
    %c2_58 = arith.constant 2 : index
    %c0_59 = arith.constant 0 : index
    %53 = vector.load %arg12[%c2_58, %c0_59] : memref<22x80xf32, #tpu.memory_space<vmem>>, vector<20x80xf32>
    %c2_60 = arith.constant 2 : index
    %c0_61 = arith.constant 0 : index
    %c0_62 = arith.constant 0 : index
    %54 = vector.load %arg3[%c2_60, %c0_61, %c0_62] : memref<3x80x64xf32, #tpu.memory_space<vmem>>, vector<1x80x64xf32>
    %55 = vector.shape_cast %54 : vector<1x80x64xf32> to vector<80x64xf32>
    %cst_63 = arith.constant dense<0.000000e+00> : vector<20x64xf32>
    %56 = tpu.matmul %53, %55, %cst_63 {dimension_numbers = #tpu.dot_dimension_numbers<[1], [0], [0], [1], [0, 0, 1, 1], [], []>} : vector<20x80xf32>, vector<80x64xf32>, vector<20x64xf32> -> vector<20x64xf32>
    %57 = arith.addf %52, %56 : vector<20x64xf32>
    %c0_64 = arith.constant 0 : index
    %c0_65 = arith.constant 0 : index
    %58 = vector.load %arg4[%c0_64, %c0_65] : memref<1x64xf32, #tpu.memory_space<vmem>>, vector<1x64xf32>
    %59 = vector.broadcast %58 : vector<1x64xf32> to vector<20x64xf32>
    %60 = arith.addf %57, %59 : vector<20x64xf32>
    %cst_66 = arith.constant 0.000000e+00 : f32
    %61 = vector.broadcast %cst_66 : f32 to vector<20x64xf32>
    %62 = arith.maximumf %60, %61 : vector<20x64xf32>
    %c0_67 = arith.constant 0 : index
    %c0_68 = arith.constant 0 : index
    %c0_69 = arith.constant 0 : index
    %63 = vector.load %arg7[%c0_67, %c0_68, %c0_69] : memref<2x10x20xf32, #tpu.memory_space<vmem>>, vector<1x10x20xf32>
    %64 = vector.shape_cast %63 : vector<1x10x20xf32> to vector<10x20xf32>
    %cst_70 = arith.constant dense<0.000000e+00> : vector<10x64xf32>
    %65 = tpu.matmul %64, %62, %cst_70 {dimension_numbers = #tpu.dot_dimension_numbers<[1], [0], [0], [1], [0, 0, 1, 1], [], []>} : vector<10x20xf32>, vector<20x64xf32>, vector<10x64xf32> -> vector<10x64xf32>
    %c1_71 = arith.constant 1 : index
    %c0_72 = arith.constant 0 : index
    %c0_73 = arith.constant 0 : index
    %66 = vector.load %arg7[%c1_71, %c0_72, %c0_73] : memref<2x10x20xf32, #tpu.memory_space<vmem>>, vector<1x10x20xf32>
    %67 = vector.shape_cast %66 : vector<1x10x20xf32> to vector<10x20xf32>
    %cst_74 = arith.constant dense<0.000000e+00> : vector<10x64xf32>
    %68 = tpu.matmul %67, %62, %cst_74 {dimension_numbers = #tpu.dot_dimension_numbers<[1], [0], [0], [1], [0, 0, 1, 1], [], []>} : vector<10x20xf32>, vector<20x64xf32>, vector<10x64xf32> -> vector<10x64xf32>
    %69 = arith.maximumf %65, %68 : vector<10x64xf32>
    %c0_75 = arith.constant 0 : index
    %c0_76 = arith.constant 0 : index
    %c0_77 = arith.constant 0 : index
    %70 = vector.load %arg8[%c0_75, %c0_76, %c0_77] : memref<2x64x32xf32, #tpu.memory_space<vmem>>, vector<1x64x32xf32>
    %71 = vector.shape_cast %70 : vector<1x64x32xf32> to vector<64x32xf32>
    %cst_78 = arith.constant dense<0.000000e+00> : vector<10x32xf32>
    %72 = tpu.matmul %69, %71, %cst_78 {dimension_numbers = #tpu.dot_dimension_numbers<[1], [0], [0], [1], [0, 0, 1, 1], [], []>} : vector<10x64xf32>, vector<64x32xf32>, vector<10x32xf32> -> vector<10x32xf32>
    %c1_79 = arith.constant 1 : index
    %c0_80 = arith.constant 0 : index
    %c0_81 = arith.constant 0 : index
    %73 = vector.load %arg8[%c1_79, %c0_80, %c0_81] : memref<2x64x32xf32, #tpu.memory_space<vmem>>, vector<1x64x32xf32>
    %74 = vector.shape_cast %73 : vector<1x64x32xf32> to vector<64x32xf32>
    %cst_82 = arith.constant dense<0.000000e+00> : vector<10x32xf32>
    %75 = tpu.matmul %69, %74, %cst_82 {dimension_numbers = #tpu.dot_dimension_numbers<[1], [0], [0], [1], [0, 0, 1, 1], [], []>} : vector<10x64xf32>, vector<64x32xf32>, vector<10x32xf32> -> vector<10x32xf32>
    %76 = arith.maximumf %72, %75 : vector<10x32xf32>
    %c0_83 = arith.constant 0 : index
    %c0_84 = arith.constant 0 : index
    %77 = vector.load %arg14[%c0_83, %c0_84] : memref<10x32xf32, #tpu.memory_space<vmem>>, vector<10x32xf32>
    tpu.vector_store %arg14[%c0_83, %c0_84], %76 {strides = array<i32>} : memref<10x32xf32, #tpu.memory_space<vmem>>, vector<10x32xf32>,
    %c0_85 = arith.constant 0 : index
    %c0_86 = arith.constant 0 : index
    %78 = vector.load %arg10[%c0_85, %c0_86] : memref<1x10xf32, #tpu.memory_space<vmem>>, vector<1x10xf32>
    %c0_87 = arith.constant 0 : index
    %c0_88 = arith.constant 0 : index
    %79 = vector.load %arg14[%c0_87, %c0_88] : memref<10x32xf32, #tpu.memory_space<vmem>>, vector<1x32xf32>
    %c0_89 = arith.constant 0 : index
    %c0_90 = arith.constant 0 : index
    %c0_91 = arith.constant 0 : index
    %80 = vector.load %arg9[%c0_89, %c0_90, %c0_91] : memref<4x32x10xf32, #tpu.memory_space<vmem>>, vector<1x32x10xf32>
    %81 = vector.shape_cast %80 : vector<1x32x10xf32> to vector<32x10xf32>
    %cst_92 = arith.constant dense<0.000000e+00> : vector<1x10xf32>
    %82 = tpu.matmul %79, %81, %cst_92 {dimension_numbers = #tpu.dot_dimension_numbers<[1], [0], [0], [1], [0, 0, 1, 1], [], []>} : vector<1x32xf32>, vector<32x10xf32>, vector<1x10xf32> -> vector<1x10xf32>
    %83 = arith.addf %78, %82 : vector<1x10xf32>
    %c1_93 = arith.constant 1 : index
    %c0_94 = arith.constant 0 : index
    %84 = vector.load %arg14[%c1_93, %c0_94] : memref<10x32xf32, #tpu.memory_space<vmem>>, vector<1x32xf32>
    %c1_95 = arith.constant 1 : index
    %c0_96 = arith.constant 0 : index
    %c0_97 = arith.constant 0 : index
    %85 = vector.load %arg9[%c1_95, %c0_96, %c0_97] : memref<4x32x10xf32, #tpu.memory_space<vmem>>, vector<1x32x10xf32>
    %86 = vector.shape_cast %85 : vector<1x32x10xf32> to vector<32x10xf32>
    %cst_98 = arith.constant dense<0.000000e+00> : vector<1x10xf32>
    %87 = tpu.matmul %84, %86, %cst_98 {dimension_numbers = #tpu.dot_dimension_numbers<[1], [0], [0], [1], [0, 0, 1, 1], [], []>} : vector<1x32xf32>, vector<32x10xf32>, vector<1x10xf32> -> vector<1x10xf32>
    %88 = arith.addf %83, %87 : vector<1x10xf32>
    %c2_99 = arith.constant 2 : index
    %c0_100 = arith.constant 0 : index
    %89 = vector.load %arg14[%c2_99, %c0_100] : memref<10x32xf32, #tpu.memory_space<vmem>>, vector<1x32xf32>
    %c2_101 = arith.constant 2 : index
    %c0_102 = arith.constant 0 : index
    %c0_103 = arith.constant 0 : index
    %90 = vector.load %arg9[%c2_101, %c0_102, %c0_103] : memref<4x32x10xf32, #tpu.memory_space<vmem>>, vector<1x32x10xf32>
    %91 = vector.shape_cast %90 : vector<1x32x10xf32> to vector<32x10xf32>
    %cst_104 = arith.constant dense<0.000000e+00> : vector<1x10xf32>
    %92 = tpu.matmul %89, %91, %cst_104 {dimension_numbers = #tpu.dot_dimension_numbers<[1], [0], [0], [1], [0, 0, 1, 1], [], []>} : vector<1x32xf32>, vector<32x10xf32>, vector<1x10xf32> -> vector<1x10xf32>
    %93 = arith.addf %88, %92 : vector<1x10xf32>
    %c3 = arith.constant 3 : index
    %c0_105 = arith.constant 0 : index
    %94 = vector.load %arg14[%c3, %c0_105] : memref<10x32xf32, #tpu.memory_space<vmem>>, vector<1x32xf32>
    %c3_106 = arith.constant 3 : index
    %c0_107 = arith.constant 0 : index
    %c0_108 = arith.constant 0 : index
    %95 = vector.load %arg9[%c3_106, %c0_107, %c0_108] : memref<4x32x10xf32, #tpu.memory_space<vmem>>, vector<1x32x10xf32>
    %96 = vector.shape_cast %95 : vector<1x32x10xf32> to vector<32x10xf32>
    %cst_109 = arith.constant dense<0.000000e+00> : vector<1x10xf32>
    %97 = tpu.matmul %94, %96, %cst_109 {dimension_numbers = #tpu.dot_dimension_numbers<[1], [0], [0], [1], [0, 0, 1, 1], [], []>} : vector<1x32xf32>, vector<32x10xf32>, vector<1x10xf32> -> vector<1x10xf32>
    %98 = arith.addf %93, %97 : vector<1x10xf32>
    %c0_110 = arith.constant 0 : index
    %c0_111 = arith.constant 0 : index
    %99 = vector.load %arg11[%c0_110, %c0_111] : memref<2x10xf32, #tpu.memory_space<vmem>>, vector<1x10xf32>
    tpu.vector_store %arg11[%c0_110, %c0_111], %98 {strides = array<i32>} : memref<2x10xf32, #tpu.memory_space<vmem>>, vector<1x10xf32>,
    %c0_112 = arith.constant 0 : index
    %c0_113 = arith.constant 0 : index
    %100 = vector.load %arg10[%c0_112, %c0_113] : memref<1x10xf32, #tpu.memory_space<vmem>>, vector<1x10xf32>
    %c5 = arith.constant 5 : index
    %c0_114 = arith.constant 0 : index
    %101 = vector.load %arg14[%c5, %c0_114] : memref<10x32xf32, #tpu.memory_space<vmem>>, vector<1x32xf32>
    %c0_115 = arith.constant 0 : index
    %c0_116 = arith.constant 0 : index
    %c0_117 = arith.constant 0 : index
    %102 = vector.load %arg9[%c0_115, %c0_116, %c0_117] : memref<4x32x10xf32, #tpu.memory_space<vmem>>, vector<1x32x10xf32>
    %103 = vector.shape_cast %102 : vector<1x32x10xf32> to vector<32x10xf32>
    %cst_118 = arith.constant dense<0.000000e+00> : vector<1x10xf32>
    %104 = tpu.matmul %101, %103, %cst_118 {dimension_numbers = #tpu.dot_dimension_numbers<[1], [0], [0], [1], [0, 0, 1, 1], [], []>} : vector<1x32xf32>, vector<32x10xf32>, vector<1x10xf32> -> vector<1x10xf32>
    %105 = arith.addf %100, %104 : vector<1x10xf32>
    %c6 = arith.constant 6 : index
    %c0_119 = arith.constant 0 : index
    %106 = vector.load %arg14[%c6, %c0_119] : memref<10x32xf32, #tpu.memory_space<vmem>>, vector<1x32xf32>
    %c1_120 = arith.constant 1 : index
    %c0_121 = arith.constant 0 : index
    %c0_122 = arith.constant 0 : index
    %107 = vector.load %arg9[%c1_120, %c0_121, %c0_122] : memref<4x32x10xf32, #tpu.memory_space<vmem>>, vector<1x32x10xf32>
    %108 = vector.shape_cast %107 : vector<1x32x10xf32> to vector<32x10xf32>
    %cst_123 = arith.constant dense<0.000000e+00> : vector<1x10xf32>
    %109 = tpu.matmul %106, %108, %cst_123 {dimension_numbers = #tpu.dot_dimension_numbers<[1], [0], [0], [1], [0, 0, 1, 1], [], []>} : vector<1x32xf32>, vector<32x10xf32>, vector<1x10xf32> -> vector<1x10xf32>
    %110 = arith.addf %105, %109 : vector<1x10xf32>
    %c7 = arith.constant 7 : index
    %c0_124 = arith.constant 0 : index
    %111 = vector.load %arg14[%c7, %c0_124] : memref<10x32xf32, #tpu.memory_space<vmem>>, vector<1x32xf32>
    %c2_125 = arith.constant 2 : index
    %c0_126 = arith.constant 0 : index
    %c0_127 = arith.constant 0 : index
    %112 = vector.load %arg9[%c2_125, %c0_126, %c0_127] : memref<4x32x10xf32, #tpu.memory_space<vmem>>, vector<1x32x10xf32>
    %113 = vector.shape_cast %112 : vector<1x32x10xf32> to vector<32x10xf32>
    %cst_128 = arith.constant dense<0.000000e+00> : vector<1x10xf32>
    %114 = tpu.matmul %111, %113, %cst_128 {dimension_numbers = #tpu.dot_dimension_numbers<[1], [0], [0], [1], [0, 0, 1, 1], [], []>} : vector<1x32xf32>, vector<32x10xf32>, vector<1x10xf32> -> vector<1x10xf32>
    %115 = arith.addf %110, %114 : vector<1x10xf32>
    %c8 = arith.constant 8 : index
    %c0_129 = arith.constant 0 : index
    %116 = vector.load %arg14[%c8, %c0_129] : memref<10x32xf32, #tpu.memory_space<vmem>>, vector<1x32xf32>
    %c3_130 = arith.constant 3 : index
    %c0_131 = arith.constant 0 : index
    %c0_132 = arith.constant 0 : index
    %117 = vector.load %arg9[%c3_130, %c0_131, %c0_132] : memref<4x32x10xf32, #tpu.memory_space<vmem>>, vector<1x32x10xf32>
    %118 = vector.shape_cast %117 : vector<1x32x10xf32> to vector<32x10xf32>
    %cst_133 = arith.constant dense<0.000000e+00> : vector<1x10xf32>
    %119 = tpu.matmul %116, %118, %cst_133 {dimension_numbers = #tpu.dot_dimension_numbers<[1], [0], [0], [1], [0, 0, 1, 1], [], []>} : vector<1x32xf32>, vector<32x10xf32>, vector<1x10xf32> -> vector<1x10xf32>
    %120 = arith.addf %115, %119 : vector<1x10xf32>
    %c1_134 = arith.constant 1 : index
    %c0_135 = arith.constant 0 : index
    %121 = vector.load %arg11[%c1_134, %c0_135] : memref<2x10xf32, #tpu.memory_space<vmem>>, vector<1x10xf32>
    tpu.vector_store %arg11[%c1_134, %c0_135], %120 {strides = array<i32>} : memref<2x10xf32, #tpu.memory_space<vmem>>, vector<1x10xf32>,
    return
  }
}

</mosaic_0001>

<bundles_post_ra>
// kernel: forward.1
= control target key start
LH: loop header
LB: loop body
LE: loop exit
PB: predicated region body
PF: predicated region fallthrough
CT: control target
= control target key end

     0   :  { %s1731_s0 = inlined_call_operand.vmem [shape: f32[38,72], index: 0, kind: input, shape index: {}]   ;;  %s1732_s1 = inlined_call_operand.vmem [shape: f32[3,72,128], index: 1, kind: input, shape index: {}]   ;;  %s1733_s2 = inlined_call_operand.vmem [shape: f32[1,128], index: 2, kind: input, shape index: {}]   ;;  %s1734_s3 = inlined_call_operand.vmem [shape: f32[3,80,64], index: 3, kind: input, shape index: {}]   ;;  %s1735_s4 = inlined_call_operand.vmem [shape: f32[1,64], index: 4, kind: input, shape index: {}]   ;;  %s1736_s5 = inlined_call_operand.vmem [shape: f32[2,18,36], index: 5, kind: input, shape index: {}]   ;;  %s1737_s6 = inlined_call_operand.vmem [shape: f32[2,128,80], index: 6, kind: input, shape index: {}]   ;;  %s1738_s7 = inlined_call_operand.vmem [shape: f32[2,10,20], index: 7, kind: input, shape index: {}]   ;;  %s1739_s8 = inlined_call_operand.vmem [shape: f32[2,64,32], index: 8, kind: input, shape index: {}]   ;;  %s1740_s9 = inlined_call_operand.vmem [shape: f32[4,32,10], index: 9, kind: input, shape index: {}]   ;;  %s1741_s10 = inlined_call_operand.vmem [shape: f32[1,10], index: 10, kind: input, shape index: {}]   ;;  %s1742_s11 = inlined_call_operand.hbm [shape: f32[2,10], index: 11, kind: output, shape index: {}]  }
   0x1   :  { %v1017_v0 = vld [vmem:[%s1732_s1 + $0xd0] sm:$0xff]  ;;  %v1016_v1 = vld [vmem:[%s1732_s1 + $0xc8] sm:$0xff]  ;;  %v52_v3 = vld [vmem:[%s1732_s1 + $0x40] sm:$0xff] }
   0x2   :  { %v998_v2 = vld [vmem:[%s1732_s1 + $0x88] sm:$0xff]  ;;  %200 = vmatpush.msra.mxu2 %v1017_v0  ;;  %v997_v4 = vld [vmem:[%s1732_s1 + $0x80] sm:$0xff]  ;;  %138 = vmatpush.msra.mxu1 %v52_v3  ;;  %v51_v6 = vld [vmem:[%s1732_s1 + $0x38] sm:$0xff] }
   0x3   :  { %91 = vmatpush.msra.mxu0 %v998_v2  ;;  %v1015_v5 = vld [vmem:[%s1732_s1 + $0xc0] sm:$0xff]  ;;  %v996_v7 = vld [vmem:[%s1732_s1 + $0x78] sm:$0xff]  ;;  %v50_v8 = vld [vmem:[%s1732_s1 + $0x30] sm:$0xff] }
   0x4   :  { %201 = vmatpush.msra.mxu2 %v1016_v1  ;;  %139 = vmatpush.msra.mxu1 %v51_v6  ;;  %v1014_v9 = vld [vmem:[%s1732_s1 + $0xb8] sm:$0xff]  ;;  %v995_v10 = vld [vmem:[%s1732_s1 + $0x70] sm:$0xff]  ;;  %v49_v11 = vld [vmem:[%s1732_s1 + $0x28] sm:$0xff] }
   0x5   :  { %92 = vmatpush.msra.mxu0 %v997_v4  ;;  %v1013_v12 = vld [vmem:[%s1732_s1 + $0xb0] sm:$0xff]  ;;  %v994_v13 = vld [vmem:[%s1732_s1 + $0x68] sm:$0xff]  ;;  %v48_v14 = vld [vmem:[%s1732_s1 + $0x20] sm:$0xff] }
   0x6   :  { %202 = vmatpush.msra.mxu2 %v1015_v5  ;;  %140 = vmatpush.msra.mxu1 %v50_v8  ;;  %v1012_v15 = vld [vmem:[%s1732_s1 + $0xa8] sm:$0xff]  ;;  %v993_v16 = vld [vmem:[%s1732_s1 + $0x60] sm:$0xff]  ;;  %v47_v17 = vld [vmem:[%s1732_s1 + $0x18] sm:$0xff] }
   0x7   :  { %93 = vmatpush.msra.mxu0 %v996_v7  ;;  %v1011_v18 = vld [vmem:[%s1732_s1 + $0xa0] sm:$0xff]  ;;  %v992_v19 = vld [vmem:[%s1732_s1 + $0x58] sm:$0xff]  ;;  %v46_v20 = vld [vmem:[%s1732_s1 + $0x10] sm:$0xff] }
   0x8   :  { %203 = vmatpush.msra.mxu2 %v1014_v9  ;;  %141 = vmatpush.msra.mxu1 %v49_v11  ;;  %v1010_v21 = vld [vmem:[%s1732_s1 + $0x98] sm:$0xff]  ;;  %v991_v22 = vld [vmem:[%s1732_s1 + $0x50] sm:$0xff]  ;;  %v45_v23 = vld [vmem:[%s1732_s1 + $0x8] sm:$0xff] }
   0x9   :  { %94 = vmatpush.msra.mxu0 %v995_v10  ;;  %v1009_v24 = vld [vmem:[%s1732_s1 + $0x90] sm:$0xff]  ;;  %v990_v25 = vld [vmem:[%s1732_s1 + $0x48] sm:$0xff] }
   0xa   :  { %204 = vmatpush.msra.mxu2 %v1013_v12  ;;  %142 = vmatpush.msra.mxu1 %v48_v14 }
   0xb   :  { %95 = vmatpush.msra.mxu0 %v994_v13 }
   0xc   :  { %205 = vmatpush.msra.mxu2 %v1012_v15  ;;  %143 = vmatpush.msra.mxu1 %v47_v17 }
   0xd   :  { %96 = vmatpush.msra.mxu0 %v993_v16 }
   0xe   :  { %206 = vmatpush.msra.mxu2 %v1011_v18  ;;  %144 = vmatpush.msra.mxu1 %v46_v20 }
   0xf   :  { %97 = vmatpush.msra.mxu0 %v992_v19 }
  0x10   :  { %16 = vsyncpa [#allocation6], 0  ;;  %207 = vmatpush.msra.mxu2 %v1010_v21  ;;  %vm68_vm0 = vcmask 588800   ;;  %v163_v26 = vld [vmem:[%s1731_s0 + $0x2] sm:$0xff]  ;;  %145 = vmatpush.msra.mxu1 %v45_v23  ;;  %v164_v30 = vld [vmem:[%s1731_s0 + $0xa] sm:$0xff]  ;;  %vm257_vm1 = vcmask 1043456  }
  0x11   :  { %98 = vmatpush.msra.mxu0 %v991_v22  ;;  %v44_v27 = vld [vmem:[%s1732_s1] sm:$0xff]  ;;  %v54_v31 = vld [vmem:[%s1731_s0 + $0x9] sm:$0xff]  ;;  %v165_v33 = vld [vmem:[%s1731_s0 + $0x12] sm:$0xff]  ;;  %vm247_vm2 = vcmask 293888   ;;  %vm417_vm3 = vcmask 654336   ;;  %vm424_vm4 = vcmask 652288  }
  0x12   :  { %v53_v28 = vld [vmem:[%s1731_s0 + $0x1] sm:$0xff]  ;;  %208 = vmatpush.msra.mxu2 %v1009_v24  ;;  %146 = vmatpush.msra.mxu1 %v44_v27  ;;  %v55_v34 = vld [vmem:[%s1731_s0 + $0x11] sm:$0xff]  ;;  %v56_v37 = vld [vmem:[%s1731_s0 + $0x19] sm:$0xff]  ;;  %vm420_vm5 = vcmask 648192   ;;  %vm591_vm6 = vcmask 162816   ;;  %vm666_vm7 = vcmask 523264  }
  0x13   :  { %v39_v29 = vld [vmem:[%s1731_s0] sm:$0xff]  ;;  %99 = vmatpush.msra.mxu0 %v990_v25  ;;  %1018 = vmatmul.msk.f32.vlgmr.msra.gmra.mxu2 %vm68_vm0, %v163_v26  ;;  %v40_v32 = vld [vmem:[%s1731_s0 + $0x8] sm:$0xff]  ;;  %v41_v35 = vld [vmem:[%s1731_s0 + $0x10] sm:$0xff]  ;;  %vm730_vm8 = vcmask 261120   ;;  %vm732_vm9 = vcmask 254976   ;;  %vm854_vm10 = vcmask 73728  }
  0x14   :  { %999 = vmatmul.msk.f32.vlgmr.msra.gmra.mxu0 %vm68_vm0, %v53_v28  ;;  %1004 = vmatmul.msk.f32.vlgmr.msra.gmra.mxu1 %vm68_vm0, %v39_v29  ;;  %v166_v36 = vld [vmem:[%s1731_s0 + $0x1a] sm:$0xff]  ;;  %v167_v39 = vld [vmem:[%s1731_s0 + $0x22] sm:$0xf]  ;;  %v245_v15 = vld [vmem:[%s1736_s5 + $0x8] sm:$0xff]  ;;  %s1162_s17 = smov [#allocation5]   ;;  %s981_s1 = sshll.u32 %s1742_s11, 4  ;;  %s982_s1 = int_to_ptr.hbm [resolvable:$true] %s981_s1 }
  0x15   :  { %v42_v38 = vld [vmem:[%s1731_s0 + $0x18] sm:$0xff]  ;;  %v57_v40 = vld [vmem:[%s1731_s0 + $0x21] sm:$0xf]  ;;  %v1133_v1 = vld [vmem:[%s1733_s2] ss:$0 sm:$0xff]  ;;  %s979_s18 = sshll.u32 %s1162_s17, 4  ;;  %s980_s18 = int_to_ptr.vmem [resolvable:$true] %s979_s18 }
  0x16   :  { %v43_v41 = vld [vmem:[%s1731_s0 + $0x20] sm:$0xf]  ;;  %v344_v16 = vld [vmem:[%s1737_s6 + $0x78] sm:$0xff]  ;;  %v343_v18 = vld [vmem:[%s1737_s6 + $0x70] sm:$0xff] }
  0x17   :  { %v244_v14 = vld [vmem:[%s1736_s5] sm:$0xff]  ;;  %v1049_v17 = vld [vmem:[%s1737_s6 + $0xf8] sm:$0xff]  ;;  %345 = vmatpush.msrb.mxu0 %v344_v16  ;;  %v1048_v19 = vld [vmem:[%s1737_s6 + $0xf0] sm:$0xff] }
  0x18   :  { %388 = vmatpush.msrb.mxu1 %v1049_v17  ;;  %v246_v20 = vld [vmem:[%s1736_s5 + $0x10] sm:$0x3]  ;;  %v1027_v21 = vld [vmem:[%s1736_s5 + $0x18] sm:$0xff]  ;;  %v1028_v22 = vld [vmem:[%s1736_s5 + $0x20] sm:$0xff] }
  0x19   :  { %346 = vmatpush.msrb.mxu0 %v343_v18  ;;  %v1029_v23 = vld [vmem:[%s1736_s5 + $0x28] sm:$0x3]  ;;  %v341_v26 = vld [vmem:[%s1737_s6 + $0x60] sm:$0xff]  ;;  %v340_v28 = vld [vmem:[%s1737_s6 + $0x58] sm:$0xff]  ;;  %v1161_v18 = vmov 0.0  }
  0x1a   :  { %389 = vmatpush.msrb.mxu1 %v1048_v19  ;;  %v342_v24 = vld [vmem:[%s1737_s6 + $0x68] sm:$0xff]  ;;  %v1046_v27 = vld [vmem:[%s1737_s6 + $0xe0] sm:$0xff]  ;;  %v1045_v29 = vld [vmem:[%s1737_s6 + $0xd8] sm:$0xff]  ;;  %422 = vst.msk [vmem:[#allocation2] sm:$0xff] %vm417_vm3, %v1161_v18 }
  0x1b   :  { %1019 = vmatmul.msk.f32.gmra.mxu2 %vm68_vm0, %v164_v30  ;;  %v1047_v25 = vld [vmem:[%s1737_s6 + $0xe8] sm:$0xff]  ;;  %347 = vmatpush.msrb.mxu0 %v342_v24  ;;  %v339_v30 = vld [vmem:[%s1737_s6 + $0x50] sm:$0xff]  ;;  %v436_v16 = vld [vmem:[%s1734_s3 + $0x18] sm:$0xff]  ;;  %423 = vst.msk [vmem:[#allocation2 + $0x8] sm:$0xff] %vm417_vm3, %v1161_v18 }
  0x1c   :  { %1000 = vmatmul.msk.f32.gmra.mxu0 %vm68_vm0, %v54_v31  ;;  %1005 = vmatmul.msk.f32.gmra.mxu1 %vm68_vm0, %v40_v32  ;;  %v1044_v31 = vld [vmem:[%s1737_s6 + $0xd0] sm:$0xff]  ;;  %v338_v32 = vld [vmem:[%s1737_s6 + $0x48] sm:$0xff]  ;;  %v1069_v17 = vld [vmem:[%s1734_s3 + $0xb8] sm:$0xff]  ;;  %425 = vst.msk [vmem:[#allocation2 + $0x10] sm:$0x3f] %vm424_vm4, %v1161_v18 }
  0x1d   :  { %390 = vmatpush.msrb.mxu1 %v1047_v25  ;;  %348 = vmatpush.msrb.mxu0 %v341_v26  ;;  %v1052_v19 = vld [vmem:[%s1734_s3 + $0x60] sm:$0xff]  ;;  %v1067_v24 = vld [vmem:[%s1734_s3 + $0xa8] sm:$0xff]  ;;  %v1050_v25 = vld [vmem:[%s1734_s3 + $0x50] sm:$0xff] }
  0x1e   :  { %v433_v26 = vld [vmem:[%s1734_s3] sm:$0xff]  ;;  %v590_v18 = vld [vmem:[%s1738_s7 + $0x8] sm:$0x3] }
  0x1f   :  { %391 = vmatpush.msrb.mxu1 %v1046_v27  ;;  %349 = vmatpush.msrb.mxu0 %v340_v28  ;;  %v1066_v27 = vld [vmem:[%s1734_s3 + $0xa0] sm:$0xff] }
  0x21   :  { %392 = vmatpush.msrb.mxu1 %v1045_v29  ;;  %350 = vmatpush.msrb.mxu0 %v339_v30 }
  0x23   :  { %1020 = vmatmul.msk.f32.gmra.mxu2 %vm68_vm0, %v165_v33  ;;  %393 = vmatpush.msrb.mxu1 %v1044_v31  ;;  %v1043_v33 = vld [vmem:[%s1737_s6 + $0xc8] sm:$0xff] }
  0x24   :  { %1001 = vmatmul.msk.f32.gmra.mxu0 %vm68_vm0, %v55_v34  ;;  %1006 = vmatmul.msk.f32.gmra.mxu1 %vm68_vm0, %v41_v35  ;;  %v337_v34 = vld [vmem:[%s1737_s6 + $0x40] sm:$0xff] }
  0x25   :  { %351 = vmatpush.msrb.mxu0 %v338_v32  ;;  %394 = vmatpush.msrb.mxu1 %v1043_v33  ;;  %v1042_v35 = vld [vmem:[%s1737_s6 + $0xc0] sm:$0xff] }
  0x27   :  { %352 = vmatpush.msrb.mxu0 %v337_v34  ;;  %395 = vmatpush.msrb.mxu1 %v1042_v35 }
  0x2b   :  { %1021 = vmatmul.msk.f32.gmra.mxu2 %vm68_vm0, %v166_v36  ;;  %v336_v36 = vld [vmem:[%s1737_s6 + $0x38] sm:$0xff] }
  0x2c   :  { %1002 = vmatmul.msk.f32.gmra.mxu0 %vm68_vm0, %v56_v37  ;;  %1007 = vmatmul.msk.f32.gmra.mxu1 %vm68_vm0, %v42_v38  ;;  %v1041_v37 = vld [vmem:[%s1737_s6 + $0xb8] sm:$0xff]  ;;  %v335_v38 = vld [vmem:[%s1737_s6 + $0x30] sm:$0xff] }
  0x2d   :  { %353 = vmatpush.msrb.mxu0 %v336_v36  ;;  %396 = vmatpush.msrb.mxu1 %v1041_v37 }
  0x2f   :  { %354 = vmatpush.msrb.mxu0 %v335_v38 }
  0x33   :  { %1022 = vmatmul.msk.f32.gmra.mxu2 %vm68_vm0, %v167_v39  ;;  %v1040_v39 = vld [vmem:[%s1737_s6 + $0xb0] sm:$0xff] }
  0x34   :  { %1003 = vmatmul.msk.f32.gmra.mxu0 %vm68_vm0, %v57_v40  ;;  %1008 = vmatmul.msk.f32.gmra.mxu1 %vm68_vm0, %v43_v41  ;;  %v334_v40 = vld [vmem:[%s1737_s6 + $0x28] sm:$0xff] }
  0x35   :  { %397 = vmatpush.msrb.mxu1 %v1040_v39  ;;  %v1039_v41 = vld [vmem:[%s1737_s6 + $0xa8] sm:$0xff]  ;;  %355 = vmatpush.msrb.mxu0 %v334_v40 }
  0x37   :  { %398 = vmatpush.msrb.mxu1 %v1039_v41 }
  0x91   :  { %v101_v42 = vpop.f32.mrf.mxu0  ;;  %v148_v43 = vpop.f32.mrf.mxu1 }
  0x92   :  { %v149_v62 = vadd.f32 %v148_v43, %v101_v42  ;;  %v333_v42 = vld [vmem:[%s1737_s6 + $0x20] sm:$0xff] }
  0x93   :  { %v1038_v43 = vld [vmem:[%s1737_s6 + $0xa0] sm:$0xff]  ;;  %356 = vmatpush.msrb.mxu0 %v333_v42 }
  0x94   :  { %399 = vmatpush.msrb.mxu1 %v1038_v43 }
  0x96   :  { %v210_v44 = vpop.f32.mrf.mxu2 }
  0x97   :  { %v225_v5 = vadd.f32 %v210_v44, %v149_v62  ;;  %v332_v44 = vld [vmem:[%s1737_s6 + $0x18] sm:$0xff]  ;;  %v442_v62 = vld [vmem:[%s1734_s3 + $0x48] sm:$0xff] }
  0x98   :  { %357 = vmatpush.msrb.mxu0 %v332_v44 }
  0x99   :  { %v104_v45 = vpop.f32.mrf.mxu0  ;;  %v151_v46 = vpop.f32.mrf.mxu1  ;;  %v234_v11 = vadd.f32 %v1133_v1, %v225_v5  ;;  %v1073_v5 = vld [vmem:[%s1734_s3 + $0xd8] sm:$0xff] }
  0x9a   :  { %v152_v59 = vadd.f32 %v151_v46, %v104_v45  ;;  %v1037_v45 = vld [vmem:[%s1737_s6 + $0x98] sm:$0xff]  ;;  %v331_v46 = vld [vmem:[%s1737_s6 + $0x10] sm:$0xff] }
  0x9b   :  { %v239_v13 = vmax.f32 %v234_v11, 0.0  ;;  %400 = vmatpush.msrb.mxu1 %v1037_v45  ;;  %358 = vmatpush.msrb.mxu0 %v331_v46  ;;  %v1071_v11 = vld [vmem:[%s1734_s3 + $0xc8] sm:$0xff] }
  0x9e   :  { %v213_v47 = vpop.f32.mrf.mxu2 }
  0x9f   :  { %v226_v2 = vadd.f32 %v213_v47, %v152_v59  ;;  %v1036_v47 = vld [vmem:[%s1737_s6 + $0x90] sm:$0xff] }
  0xa0   :  { %401 = vmatpush.msrb.mxu1 %v1036_v47 }
  0xa1   :  { %v107_v48 = vpop.f32.mrf.mxu0  ;;  %v154_v49 = vpop.f32.mrf.mxu1  ;;  %v235_v9 = vadd.f32 %v1133_v1, %v226_v2  ;;  %v1074_v2 = vld [vmem:[%s1734_s3 + $0xe0] sm:$0xff] }
  0xa2   :  { %v155_v57 = vadd.f32 %v154_v49, %v107_v48  ;;  %v330_v48 = vld [vmem:[%s1737_s6 + $0x8] sm:$0xff] }
  0xa3   :  { %v240_v12 = vmax.f32 %v235_v9, 0.0  ;;  %v1035_v49 = vld [vmem:[%s1737_s6 + $0x88] sm:$0xff]  ;;  %359 = vmatpush.msrb.mxu0 %v330_v48  ;;  %v1055_v9 = vld [vmem:[%s1734_s3 + $0x78] sm:$0xff] }
  0xa4   :  { %402 = vmatpush.msrb.mxu1 %v1035_v49 }
  0xa6   :  { %v216_v50 = vpop.f32.mrf.mxu2 }
  0xa7   :  { %v227_v63 = vadd.f32 %v216_v50, %v155_v57  ;;  %v329_v50 = vld [vmem:[%s1737_s6] sm:$0xff] }
  0xa8   :  { %360 = vmatpush.msrb.mxu0 %v329_v50 }
  0xa9   :  { %v110_v51 = vpop.f32.mrf.mxu0  ;;  %v157_v52 = vpop.f32.mrf.mxu1  ;;  %v236_v7 = vadd.f32 %v1133_v1, %v227_v63  ;;  %v1075_v63 = vld [vmem:[%s1734_s3 + $0xe8] sm:$0xff] }
  0xaa   :  { %v158_v54 = vadd.f32 %v157_v52, %v110_v51  ;;  %v1034_v51 = vld [vmem:[%s1737_s6 + $0x80] sm:$0xff]  ;;  %556 = vmatpush.msra.mxu0 %v1075_v63 }
  0xab   :  { %v241_v10 = vmax.f32 %v236_v7, 0.0  ;;  %403 = vmatpush.msrb.mxu1 %v1034_v51  ;;  %v439_v7 = vld [vmem:[%s1734_s3 + $0x30] sm:$0xff]  ;;  %v665_v51 = vld [vmem:[%s1739_s8 + $0x38] sm:$0xff] }
  0xac   :  { %557 = vmatpush.msra.mxu0 %v1074_v2 }
  0xae   :  { %v219_v53 = vpop.f32.mrf.mxu2  ;;  %558 = vmatpush.msra.mxu0 %v1073_v5  ;;  %v1134_v5 = vld [vmem:[%s1735_s4] ss:$0 sm:$0xff] }
  0xaf   :  { %v228_v60 = vadd.f32 %v219_v53, %v158_v54 }
  0xb1   :  { %v113_v55 = vpop.f32.mrf.mxu0  ;;  %v160_v56 = vpop.f32.mrf.mxu1  ;;  %v237_v4 = vadd.f32 %v1133_v1, %v228_v60 }
  0xb2   :  { %v161_v58 = vadd.f32 %v160_v56, %v113_v55 }
  0xb3   :  { %v242_v8 = vmax.f32 %v237_v4, 0.0  ;;  %v440_v4 = vld [vmem:[%s1734_s3 + $0x38] sm:$0xff] }
  0xb6   :  { %v222_v61 = vpop.f32.mrf.mxu2 }
  0xb7   :  { %v229_v0 = vadd.f32 %v222_v61, %v161_v58  ;;  %v1059_v61 = vld [vmem:[%s1734_s3 + $0x98] sm:$0xff] }
  0xb8   :  { %472 = vmatpush.msrb.mxu2 %v1059_v61 }
  0xb9   :  { %v238_v3 = vadd.f32 %v1133_v1, %v229_v0  ;;  %v1058_v0 = vld [vmem:[%s1734_s3 + $0x90] sm:$0xff]  ;;  %v441_v1 = vld [vmem:[%s1734_s3 + $0x40] sm:$0xff] }
  0xba   :  { %473 = vmatpush.msrb.mxu2 %v1058_v0 }
  0xbb   :  { %v243_v6 = vmax.f32 %v238_v3, 0.0  ;;  %v1057_v3 = vld [vmem:[%s1734_s3 + $0x88] sm:$0xff] }
  0xbc   :  { %474 = vmatpush.msrb.mxu2 %v1057_v3 }
  0xbd   :  { %1023 = vmatpush.msk.msra.mxu3 %vm257_vm1, %v243_v6 }
  0xbf   :  { %273 = vmatpush.msra.mxu3 %v242_v8 }
  0xc1   :  { %274 = vmatpush.msra.mxu3 %v241_v10 }
  0xc3   :  { %275 = vmatpush.msra.mxu3 %v240_v12 }
  0xc5   :  { %276 = vmatpush.msra.mxu3 %v239_v13 }
  0xc6   :  { %1024 = vmatmul.msk.f32.vlgmr.msra.gmra.mxu3 %vm247_vm2, %v244_v14  ;;  %v1070_v14 = vld [vmem:[%s1734_s3 + $0xc0] sm:$0xff] }
  0xc7   :  { %1030 = vmatpush.msk.msrb.mxu3 %vm257_vm1, %v243_v6  ;;  %v1056_v6 = vld [vmem:[%s1734_s3 + $0x80] sm:$0xff] }
  0xc8   :  { %475 = vmatpush.msrb.mxu2 %v1056_v6 }
  0xc9   :  { %312 = vmatpush.msrb.mxu3 %v242_v8  ;;  %v1072_v8 = vld [vmem:[%s1734_s3 + $0xd0] sm:$0xff] }
  0xca   :  { %559 = vmatpush.msra.mxu0 %v1072_v8  ;;  %476 = vmatpush.msrb.mxu2 %v1055_v9 }
  0xcb   :  { %313 = vmatpush.msrb.mxu3 %v241_v10  ;;  %v438_v10 = vld [vmem:[%s1734_s3 + $0x28] sm:$0xff] }
  0xcc   :  { %560 = vmatpush.msra.mxu0 %v1071_v11 }
  0xcd   :  { %314 = vmatpush.msrb.mxu3 %v240_v12  ;;  %v1054_v12 = vld [vmem:[%s1734_s3 + $0x70] sm:$0xff] }
  0xce   :  { %1025 = vmatmul.msk.f32.gmra.mxu3 %vm247_vm2, %v245_v15  ;;  %477 = vmatpush.msrb.mxu2 %v1054_v12  ;;  %v1053_v15 = vld [vmem:[%s1734_s3 + $0x68] sm:$0xff]  ;;  %v1082_v12 = vld [vmem:[%s1738_s7 + $0x10] sm:$0xff] }
  0xcf   :  { %315 = vmatpush.msrb.mxu3 %v239_v13  ;;  %v437_v13 = vld [vmem:[%s1734_s3 + $0x20] sm:$0xff]  ;;  %561 = vmatpush.msra.mxu0 %v1070_v14  ;;  %v1096_v14 = vld [vmem:[%s1739_s8 + $0x78] sm:$0xff] }
  0xd0   :  { %478 = vmatpush.msrb.mxu2 %v1053_v15  ;;  %v1095_v15 = vld [vmem:[%s1739_s8 + $0x70] sm:$0xff] }
  0xd1   :  { %507 = vmatpush.msra.mxu3 %v442_v62  ;;  %562 = vmatpush.msra.mxu0 %v1069_v17  ;;  %v1083_v17 = vld [vmem:[%s1738_s7 + $0x18] sm:$0x3] }
  0xd2   :  { %479 = vmatpush.msrb.mxu2 %v1052_v19  ;;  %v1093_v19 = vld [vmem:[%s1739_s8 + $0x60] sm:$0xff] }
  0xd3   :  { %508 = vmatpush.msra.mxu3 %v441_v1 }
  0xd5   :  { %509 = vmatpush.msra.mxu3 %v440_v4 }
  0xd6   :  { %1026 = vmatmul.msk.f32.gmra.mxu3 %vm247_vm2, %v246_v20  ;;  %v435_v20 = vld [vmem:[%s1734_s3 + $0x10] sm:$0xff] }
  0xd7   :  { %510 = vmatpush.msra.mxu3 %v439_v7 }
  0xd9   :  { %511 = vmatpush.msra.mxu3 %v438_v10 }
  0xdb   :  { %512 = vmatpush.msra.mxu3 %v437_v13  ;;  %v589_v13 = vld [vmem:[%s1738_s7] sm:$0xff] }
  0xdd   :  { %513 = vmatpush.msra.mxu3 %v436_v16  ;;  %v1094_v16 = vld [vmem:[%s1739_s8 + $0x68] sm:$0xff] }
  0xde   :  { %1031 = vmatmul.msk.f32.vlgmr.msrb.gmra.mxu3 %vm247_vm2, %v1027_v21  ;;  %v1068_v21 = vld [vmem:[%s1734_s3 + $0xb0] sm:$0xff] }
  0xdf   :  { %514 = vmatpush.msra.mxu3 %v435_v20  ;;  %563 = vmatpush.msra.mxu0 %v1068_v21  ;;  %v1092_v20 = vld [vmem:[%s1739_s8 + $0x58] sm:$0xff]  ;;  %v1091_v21 = vld [vmem:[%s1739_s8 + $0x50] sm:$0xff] }
  0xe1   :  { %564 = vmatpush.msra.mxu0 %v1067_v24  ;;  %v1090_v24 = vld [vmem:[%s1739_s8 + $0x48] sm:$0xff] }
  0xe3   :  { %565 = vmatpush.msra.mxu0 %v1066_v27 }
  0xe6   :  { %1032 = vmatmul.msk.f32.gmra.mxu3 %vm247_vm2, %v1028_v22  ;;  %v1051_v22 = vld [vmem:[%s1734_s3 + $0x58] sm:$0xff] }
  0xe7   :  { %480 = vmatpush.msrb.mxu2 %v1051_v22  ;;  %v659_v22 = vld [vmem:[%s1739_s8 + $0x8] sm:$0xff] }
  0xe9   :  { %481 = vmatpush.msrb.mxu2 %v1050_v25  ;;  %v1089_v25 = vld [vmem:[%s1739_s8 + $0x40] sm:$0xff] }
  0xee   :  { %1033 = vmatmul.msk.f32.gmra.mxu3 %vm247_vm2, %v1029_v23  ;;  %v434_v23 = vld [vmem:[%s1734_s3 + $0x8] sm:$0xff] }
  0xef   :  { %515 = vmatpush.msra.mxu3 %v434_v23  ;;  %v658_v23 = vld [vmem:[%s1739_s8] sm:$0xff] }
  0xf1   :  { %516 = vmatpush.msra.mxu3 %v433_v26 }
  0xf3   :  { %681 = vmatpush.msrb.mxu3 %v665_v51 }
 0x149   :  { %v278_v52 = vpop.f32.mrf.mxu3 }
 0x151   :  { %v281_v53 = vpop.f32.mrf.mxu3 }
 0x159   :  { %v284_v54 = vpop.f32.mrf.mxu3 }
 0x161   :  { %v317_v55 = vpop.f32.mrf.mxu3 }
 0x162   :  { %v326_v56 = vmax.f32 %v278_v52, %v317_v55  ;;  %v664_v52 = vld [vmem:[%s1739_s8 + $0x30] sm:$0xff] }
 0x163   :  { %682 = vmatpush.msrb.mxu3 %v664_v52 }
 0x164   :  { %361 = vmatmul.f32.vlgmr.msrb.gmra.mxu0 %v326_v56  ;;  %404 = vmatmul.f32.vlgmr.msrb.gmra.mxu1 %v326_v56  ;;  %v663_v56 = vld [vmem:[%s1739_s8 + $0x28] sm:$0xff] }
 0x165   :  { %683 = vmatpush.msrb.mxu3 %v663_v56 }
 0x169   :  { %v320_v57 = vpop.f32.mrf.mxu3 }
 0x16a   :  { %v327_v58 = vmax.f32 %v281_v53, %v320_v57  ;;  %v662_v57 = vld [vmem:[%s1739_s8 + $0x20] sm:$0xff] }
 0x16b   :  { %684 = vmatpush.msrb.mxu3 %v662_v57 }
 0x16c   :  { %364 = vmatmul.f32.gmra.mxu0 %v327_v58  ;;  %407 = vmatmul.f32.gmra.mxu1 %v327_v58  ;;  %v661_v58 = vld [vmem:[%s1739_s8 + $0x18] sm:$0xff] }
 0x16d   :  { %685 = vmatpush.msrb.mxu3 %v661_v58 }
 0x171   :  { %v323_v59 = vpop.f32.mrf.mxu3 }
 0x172   :  { %v328_v60 = vmax.f32 %v284_v54, %v323_v59 }
 0x174   :  { %367 = vmatmul.f32.gmra.mxu0 %v328_v60  ;;  %410 = vmatmul.f32.gmra.mxu1 %v328_v60  ;;  %v660_v60 = vld [vmem:[%s1739_s8 + $0x10] sm:$0xff] }
 0x175   :  { %686 = vmatpush.msrb.mxu3 %v660_v60 }
 0x177   :  { %687 = vmatpush.msrb.mxu3 %v659_v22 }
 0x179   :  { %688 = vmatpush.msrb.mxu3 %v658_v23 }
 0x1e1   :  { %v362_v28 = vpop.f32.mrf.mxu0  ;;  %v405_v29 = vpop.f32.mrf.mxu1 }
 0x1e2   :  { %v414_v30 = vmax.f32 %v362_v28, %v405_v29 }
 0x1e4   :  { %418 = vst.msk [vmem:[#allocation3] sm:$0xff] %vm417_vm3, %v414_v30 }
 0x1e9   :  { %v365_v31 = vpop.f32.mrf.mxu0  ;;  %v408_v32 = vpop.f32.mrf.mxu1 }
 0x1ea   :  { %v415_v33 = vmax.f32 %v365_v31, %v408_v32  ;;  %v739_v32 = vld [vmem:[%s1740_s9 + $0x18] sm:$0xff] }
 0x1eb   :  { %v426_v34 = vld [vmem:[#allocation3] sm:$0xff] }
 0x1ec   :  { %419 = vst.msk [vmem:[#allocation3 + $0x8] sm:$0xff] %vm417_vm3, %v415_v33  ;;  %v1103_v33 = vld [vmem:[%s1740_s9 + $0x38] sm:$0xff] }
 0x1ed   :  { %427 = vst.msk [vmem:[#allocation2 + $0x1] sm:$0xff] %vm417_vm3, %v426_v34  ;;  %v738_v34 = vld [vmem:[%s1740_s9 + $0x10] sm:$0xff] }
 0x1f1   :  { %v368_v35 = vpop.f32.mrf.mxu0  ;;  %v411_v36 = vpop.f32.mrf.mxu1 }
 0x1f2   :  { %v416_v37 = vmax.f32 %v368_v35, %v411_v36  ;;  %v1102_v35 = vld [vmem:[%s1740_s9 + $0x30] sm:$0xff]  ;;  %v737_v36 = vld [vmem:[%s1740_s9 + $0x8] sm:$0xff] }
 0x1f4   :  { %421 = vst.msk [vmem:[#allocation3 + $0x10] sm:$0x3] %vm420_vm5, %v416_v37  ;;  %v443_v38 = vld [vmem:[#allocation2 + $0x1] sm:$0xff] }
 0x1f5   :  { %v430_v39 = vld [vmem:[#allocation2] sm:$0xff]  ;;  %1060 = vmatmul.msk.f32.vlgmr.msrb.gmra.mxu2 %vm417_vm3, %v443_v38  ;;  %v1101_v37 = vld [vmem:[%s1740_s9 + $0x28] sm:$0xff]  ;;  %v1108_v38 = vld [vmem:[%s1740_s9 + $0x58] sm:$0xff] }
 0x1f6   :  { %v527_v40 = vld [vmem:[#allocation2 + $0x2] sm:$0xff]  ;;  %1063 = vmatmul.msk.f32.vlgmr.msra.gmra.mxu3 %vm417_vm3, %v430_v39  ;;  %815 = vmatpush.msrb.mxu0 %v1108_v38 }
 0x1f7   :  { %1076 = vmatmul.msk.f32.vlgmr.msra.gmra.mxu0 %vm417_vm3, %v527_v40  ;;  %785 = vmatpush.msra.mxu3 %v1103_v33  ;;  %v736_v39 = vld [vmem:[%s1740_s9] sm:$0xff] }
 0x1f8   :  { %v1100_v40 = vld [vmem:[%s1740_s9 + $0x20] sm:$0xff] }
 0x1f9   :  { %786 = vmatpush.msra.mxu3 %v1102_v35 }
 0x1fb   :  { %v428_v41 = vld [vmem:[#allocation3 + $0x9] sm:$0xff]  ;;  %787 = vmatpush.msra.mxu3 %v1101_v37 }
 0x1fc   :  { %429 = vst.msk [vmem:[#allocation2 + $0xb] sm:$0xff] %vm417_vm3, %v428_v41  ;;  %v1107_v41 = vld [vmem:[%s1740_s9 + $0x50] sm:$0xff] }
 0x1fd   :  { %816 = vmatpush.msrb.mxu0 %v1107_v41  ;;  %788 = vmatpush.msra.mxu3 %v1100_v40 }
 0x203   :  { %v444_v42 = vld [vmem:[#allocation2 + $0x9] sm:$0xff]  ;;  %v445_v45 = vld [vmem:[#allocation2 + $0x11] sm:$0xf] }
 0x204   :  { %v431_v43 = vld [vmem:[#allocation2 + $0x8] sm:$0xff]  ;;  %1061 = vmatmul.msk.f32.gmra.mxu2 %vm417_vm3, %v444_v42  ;;  %v432_v46 = vld [vmem:[#allocation2 + $0x10] sm:$0xf] }
 0x205   :  { %v528_v44 = vld [vmem:[#allocation2 + $0xa] sm:$0xff]  ;;  %1064 = vmatmul.msk.f32.gmra.mxu3 %vm417_vm3, %v431_v43  ;;  %v529_v47 = vld [vmem:[#allocation2 + $0x12] sm:$0xf]  ;;  %v1113_v43 = vld [vmem:[%s1740_s9 + $0x78] sm:$0xff] }
 0x206   :  { %1077 = vmatmul.msk.f32.gmra.mxu0 %vm417_vm3, %v528_v44  ;;  %v1106_v42 = vld [vmem:[%s1740_s9 + $0x48] sm:$0xff]  ;;  %v1112_v44 = vld [vmem:[%s1740_s9 + $0x70] sm:$0xff] }
 0x207   :  { %817 = vmatpush.msrb.mxu0 %v1106_v42 }
 0x20c   :  { %1062 = vmatmul.msk.f32.gmra.mxu2 %vm417_vm3, %v445_v45  ;;  %v1105_v45 = vld [vmem:[%s1740_s9 + $0x40] sm:$0xff] }
 0x20d   :  { %1065 = vmatmul.msk.f32.gmra.mxu3 %vm417_vm3, %v432_v46  ;;  %818 = vmatpush.msrb.mxu0 %v1105_v45  ;;  %v1111_v46 = vld [vmem:[%s1740_s9 + $0x68] sm:$0xff] }
 0x20e   :  { %1078 = vmatmul.msk.f32.gmra.mxu0 %vm417_vm3, %v529_v47  ;;  %v1110_v47 = vld [vmem:[%s1740_s9 + $0x60] sm:$0xff] }
 0x20f   :  { %906 = vmatpush.msra.mxu0 %v1103_v33 }
 0x211   :  { %907 = vmatpush.msra.mxu0 %v1102_v35 }
 0x213   :  { %908 = vmatpush.msra.mxu0 %v1101_v37 }
 0x215   :  { %909 = vmatpush.msra.mxu0 %v1100_v40 }
 0x274   :  { %v567_v48 = vpop.f32.mrf.mxu0 }
 0x278   :  { %v483_v49 = vpop.f32.mrf.mxu2 }
 0x279   :  { %v518_v50 = vpop.f32.mrf.mxu3 }
 0x27a   :  { %v519_v61 = vadd.f32 %v518_v50, %v483_v49 }
 0x27c   :  { %v576_v3 = vadd.f32 %v567_v48, %v519_v61 }
 0x27e   :  { %v583_v9 = vadd.f32 %v1134_v5, %v576_v3 }
 0x280   :  { %v586_v11 = vmax.f32 %v583_v9, 0.0 }
 0x283   :  { %v570_v53 = vpop.f32.mrf.mxu0 }
 0x287   :  { %v486_v54 = vpop.f32.mrf.mxu2 }
 0x288   :  { %v521_v55 = vpop.f32.mrf.mxu3 }
 0x289   :  { %v522_v59 = vadd.f32 %v521_v55, %v486_v54 }
 0x28b   :  { %v577_v0 = vadd.f32 %v570_v53, %v522_v59  ;;  %v573_v2 = vpop.f32.mrf.mxu0 }
 0x28d   :  { %v584_v7 = vadd.f32 %v1134_v5, %v577_v0 }
 0x28f   :  { %v489_v62 = vpop.f32.mrf.mxu2  ;;  %v587_v10 = vmax.f32 %v584_v7, 0.0 }
 0x290   :  { %v524_v63 = vpop.f32.mrf.mxu3 }
 0x291   :  { %v525_v1 = vadd.f32 %v524_v63, %v489_v62  ;;  %v734_v62 = vld [vmem:[%s1741_s10] sm:$0x1] }
 0x293   :  { %v578_v4 = vadd.f32 %v573_v2, %v525_v1 }
 0x295   :  { %v585_v6 = vadd.f32 %v1134_v5, %v578_v4  ;;  %v856_v4 = vld [vmem:[%s1741_s10] sm:$0x1] }
 0x297   :  { %v588_v8 = vmax.f32 %v585_v6, 0.0 }
 0x299   :  { %1079 = vmatpush.msk.msra.mxu1 %vm257_vm1, %v588_v8  ;;  %1084 = vmatpush.msk.msra.mxu2 %vm257_vm1, %v588_v8 }
 0x29b   :  { %615 = vmatpush.msra.mxu1 %v587_v10  ;;  %647 = vmatpush.msra.mxu2 %v587_v10 }
 0x29d   :  { %616 = vmatpush.msra.mxu1 %v586_v11  ;;  %648 = vmatpush.msra.mxu2 %v586_v11 }
 0x29e   :  { %1085 = vmatmul.msk.f32.vlgmr.msra.gmra.mxu2 %vm591_vm6, %v1082_v12  ;;  %1080 = vmatmul.msk.f32.vlgmr.msra.gmra.mxu1 %vm591_vm6, %v589_v13 }
 0x29f   :  { %713 = vmatpush.msrb.mxu1 %v1096_v14  ;;  %755 = vmatpush.msrb.mxu2 %v739_v32 }
 0x2a1   :  { %714 = vmatpush.msrb.mxu1 %v1095_v15  ;;  %756 = vmatpush.msrb.mxu2 %v738_v34 }
 0x2a3   :  { %715 = vmatpush.msrb.mxu1 %v1094_v16  ;;  %757 = vmatpush.msrb.mxu2 %v737_v36 }
 0x2a5   :  { %716 = vmatpush.msrb.mxu1 %v1093_v19  ;;  %758 = vmatpush.msrb.mxu2 %v736_v39 }
 0x2a6   :  { %1086 = vmatmul.msk.f32.gmra.mxu2 %vm591_vm6, %v1083_v17  ;;  %1081 = vmatmul.msk.f32.gmra.mxu1 %vm591_vm6, %v590_v18 }
 0x2a7   :  { %717 = vmatpush.msrb.mxu1 %v1092_v20  ;;  %845 = vmatpush.msra.mxu2 %v1113_v43 }
 0x2a9   :  { %718 = vmatpush.msrb.mxu1 %v1091_v21  ;;  %846 = vmatpush.msra.mxu2 %v1112_v44 }
 0x2ab   :  { %719 = vmatpush.msrb.mxu1 %v1090_v24  ;;  %847 = vmatpush.msra.mxu2 %v1111_v46 }
 0x2ad   :  { %720 = vmatpush.msrb.mxu1 %v1089_v25  ;;  %848 = vmatpush.msra.mxu2 %v1110_v47 }
 0x2af   :  { %935 = vmatpush.msra.mxu1 %v1108_v38 }
 0x2b1   :  { %936 = vmatpush.msra.mxu1 %v1107_v41 }
 0x2b3   :  { %937 = vmatpush.msra.mxu1 %v1106_v42 }
 0x2b5   :  { %938 = vmatpush.msra.mxu1 %v1105_v45 }
 0x31b   :  { %v618_v26 = vpop.f32.mrf.mxu1 }
 0x321   :  { %v650_v27 = vpop.f32.mrf.mxu2 }
 0x322   :  { %v656_v28 = vmax.f32 %v618_v26, %v650_v27 }
 0x323   :  { %v621_v29 = vpop.f32.mrf.mxu1 }
 0x324   :  { %1087 = vmatmul.msk.f32.vlgmr.msrb.gmra.mxu3 %vm666_vm7, %v656_v28  ;;  %1097 = vmatmul.msk.f32.vlgmr.msrb.gmra.mxu1 %vm666_vm7, %v656_v28 }
 0x325   :  { %877 = vmatpush.msrb.mxu3 %v739_v32 }
 0x327   :  { %878 = vmatpush.msrb.mxu3 %v738_v34 }
 0x329   :  { %v653_v30 = vpop.f32.mrf.mxu2  ;;  %879 = vmatpush.msrb.mxu3 %v737_v36 }
 0x32a   :  { %v657_v31 = vmax.f32 %v621_v29, %v653_v30 }
 0x32b   :  { %880 = vmatpush.msrb.mxu3 %v736_v39 }
 0x32c   :  { %1088 = vmatmul.msk.f32.gmra.mxu3 %vm666_vm7, %v657_v31  ;;  %1098 = vmatmul.msk.f32.gmra.mxu1 %vm666_vm7, %v657_v31 }
 0x3a1   :  { %v722_v48 = vpop.f32.mrf.mxu1 }
 0x3a7   :  { %v690_v49 = vpop.f32.mrf.mxu3 }
 0x3a8   :  { %v728_v50 = vmax.f32 %v690_v49, %v722_v48 }
 0x3a9   :  { %v725_v51 = vpop.f32.mrf.mxu1 }
 0x3aa   :  { %731 = vst.msk [vmem:[#allocation4] sm:$0xff] %vm730_vm8, %v728_v50 }
 0x3af   :  { %v693_v52 = vpop.f32.mrf.mxu3 }
 0x3b0   :  { %v729_v53 = vmax.f32 %v693_v52, %v725_v51 }
 0x3b1   :  { %v735_v54 = vld [vmem:[#allocation4] sm:$0x1]  ;;  %v764_v55 = vld [vmem:[#allocation4 + $0x1] sm:$0x1]  ;;  %v794_v56 = vld [vmem:[#allocation4 + $0x2] sm:$0x1] }
 0x3b2   :  { %1099 = vmatmul.msk.f32.vlgmr.msrb.gmra.mxu2 %vm730_vm8, %v735_v54  ;;  %1104 = vmatmul.msk.f32.vlgmr.msra.gmra.mxu3 %vm730_vm8, %v764_v55  ;;  %733 = vst.msk [vmem:[#allocation4 + $0x8] sm:$0x3] %vm732_vm9, %v729_v53  ;;  %v915_v57 = vld [vmem:[#allocation4 + $0x7] sm:$0x1]  ;;  %v824_v58 = vld [vmem:[#allocation4 + $0x3] sm:$0x1] }
 0x3b3   :  { %1109 = vmatmul.msk.f32.vlgmr.msrb.gmra.mxu0 %vm730_vm8, %v794_v56  ;;  %964 = vmatpush.msrb.mxu2 %v1113_v43  ;;  %v857_v59 = vld [vmem:[#allocation4 + $0x5] sm:$0x1]  ;;  %v886_v60 = vld [vmem:[#allocation4 + $0x6] sm:$0x1] }
 0x3b4   :  { %1125 = vmatmul.msk.f32.vlgmr.msra.gmra.mxu1 %vm730_vm8, %v915_v57 }
 0x3b5   :  { %965 = vmatpush.msrb.mxu2 %v1112_v44 }
 0x3b7   :  { %966 = vmatpush.msrb.mxu2 %v1111_v46 }
 0x3b9   :  { %967 = vmatpush.msrb.mxu2 %v1110_v47  ;;  %v944_v61 = vld [vmem:[#allocation4 + $0x8] sm:$0x1] }
 0x3ba   :  { %1114 = vmatmul.msk.f32.vlgmr.msra.gmra.mxu2 %vm730_vm8, %v824_v58  ;;  %1115 = vmatmul.msk.f32.vlgmr.msrb.gmra.mxu3 %vm730_vm8, %v857_v59 }
 0x3bb   :  { %1120 = vmatmul.msk.f32.vlgmr.msra.gmra.mxu0 %vm730_vm8, %v886_v60 }
 0x3c2   :  { %1130 = vmatmul.msk.f32.vlgmr.msrb.gmra.mxu2 %vm730_vm8, %v944_v61 }
 0x430   :  { %v820_v63 = vpop.f32.mrf.mxu0 }
 0x431   :  { %v940_v12 = vpop.f32.mrf.mxu1 }
 0x435   :  { %v760_v0 = vpop.f32.mrf.mxu2  ;;  %v790_v1 = vpop.f32.mrf.mxu3 }
 0x436   :  { %v763_v2 = vadd.f32 %v760_v0, %v734_v62 }
 0x438   :  { %v793_v3 = vadd.f32 %v790_v1, %v763_v2  ;;  %v911_v10 = vpop.f32.mrf.mxu0 }
 0x43a   :  { %v823_v5 = vadd.f32 %v820_v63, %v793_v3 }
 0x43d   :  { %v850_v6 = vpop.f32.mrf.mxu2  ;;  %v882_v7 = vpop.f32.mrf.mxu3 }
 0x43e   :  { %v853_v8 = vadd.f32 %v850_v6, %v823_v5  ;;  %v885_v9 = vadd.f32 %v882_v7, %v856_v4 }
 0x440   :  { %855 = vst.msk [vmem:[#allocation5] sm:$0x1] %vm854_vm10, %v853_v8  ;;  %v914_v11 = vadd.f32 %v911_v10, %v885_v9 }
 0x442   :  { %v943_v13 = vadd.f32 %v940_v12, %v914_v11 }
 0x445   :  { %v969_v14 = vpop.f32.mrf.mxu2 }
 0x446   :  { %v972_v15 = vadd.f32 %v969_v14, %v943_v13 }
 0x448   :  { %973 = vst.msk [vmem:[#allocation5 + $0x1] sm:$0x1] %vm854_vm10, %v972_v15 }
 0x449   :  { %984 = dma.vmem_to_hbm [thread:$0]  %s980_s18, 32, %s982_s1, [#allocation6]  }
 0x44a   :  { %1159 = dma.done.wait [#allocation6], 32  }
 0x44b   :  { %1160 = vsyncadd [#allocation6], 4294967264 }
 0x44c   :  { %989 = vsyncpa [#allocation6], 1 }

</bundles_post_ra>
